<compile_context>
chip_gen: v6e
topology: v6e:2x2x1
jax: 0.10.0
libtpu: 0.0.40
codegen_flags: <defaults>
</compile_context>

<pallas_src>
import functools

import jax
import jax.numpy as jnp
from jax import lax
from jax.experimental import pallas as pl
from jax.experimental.pallas import tpu as pltpu


def _make_loss_kernel(accumulate):
    """Builds the per-grid-step kernel.

    accumulate=True : single resident (1, 1) accumulator output
                      (grid axis "arbitrary"; best on single-TC v5e/v6e).
    accumulate=False: one (1, 1) partial per grid step
                      (grid axis "parallel"; lets v7x megacore shard the grid).
    """

    def kernel(ypred_ref, xyz_ref, out_ref):
        # ypred_ref: (TB, J, N) f32  logits, classes-major (no wrapper transpose)
        # xyz_ref  : (TB, 3, N) f32  point coords, N on lanes
        a = ypred_ref[...]
        x = xyz_ref[...]

        # Pairwise geometry on the MXU: Gram matrix G[b, n, m] = <x_n, x_m>.
        g = lax.dot_general(
            x, x,
            dimension_numbers=(((1,), (1,)), ((0,), (0,))),
            preferred_element_type=jnp.float32)                  # (TB, N, N)

        # d2[n, m] = r[n] + r[m] - 2 G[n, m].  The per-row constant r[n] does
        # not affect argmax/argmin along m, so only the row term is needed.
        r_row = jnp.sum(x * x, axis=1, keepdims=True)            # (TB, 1, N)
        e2 = r_row - 2.0 * g                                     # same per-row ordering as d2

        tb, _, n = e2.shape
        col = lax.broadcasted_iota(jnp.int32, (tb, n, n), 2)
        row = lax.broadcasted_iota(jnp.int32, (tb, n, n), 1)

        # argmax along the last axis, first occurrence (torch.max semantics).
        maxv = jnp.max(e2, axis=-1, keepdims=True)
        idx_max = jnp.min(jnp.where(e2 == maxv, col, n), axis=-1, keepdims=True)

        # Mask the self-distance with +inf, then argmin (first occurrence).
        e2_m = jnp.where(row == col, jnp.inf, e2)
        minv = jnp.min(e2_m, axis=-1, keepdims=True)
        idx_min = jnp.min(jnp.where(e2_m == minv, col, n), axis=-1, keepdims=True)

        # Fused (+1 at argmax, -1 at argmin) selection matrix.
        onehot_diff = ((col == idx_max).astype(jnp.float32)
                       - (col == idx_min).astype(jnp.float32))   # (TB, N, N)

        # Never materialize sim:
        #   h[b, j, n] = sum_m a[b, j, m] * onehot_diff[b, n, m]
        #   sum_{b, n} (sim@argmax - sim@argmin) == sum(a * h)
        h = lax.dot_general(
            a, onehot_diff,
            dimension_numbers=(((2,), (2,)), ((0,), (0,))),
            preferred_element_type=jnp.float32)                  # (TB, J, N)

        partial = jnp.sum(a * h)

        if accumulate:
            @pl.when(pl.program_id(0) == 0)
            def _():
                out_ref[...] = jnp.zeros_like(out_ref)
            out_ref[...] += partial
        else:
            out_ref[...] = jnp.zeros_like(out_ref) + partial

    return kernel


def _vmem_capacity_bytes():
    try:
        return int(pltpu.get_tpu_info().vmem_capacity_bytes)
    except Exception:
        return 64 * 2 ** 20       # conservative (v7x-sized) fallback


def _is_megacore():
    # v7x has 2 TensorCores per chip: per-step partials + "parallel" grid let
    # megacore shard the grid.  Single-TC chips prefer the resident accumulator.
    try:
        kind = jax.devices()[0].device_kind.lower()
    except Exception:
        return False
    return "v7" in kind


def _round_up(v, m):
    return -(-v // m) * m


def _auto_tb(J, N, BL, budget_bytes):
    """Largest slice batch whose per-step VMEM footprint fits the budget."""
    pj = _round_up(J, 8)
    pn = _round_up(N, 128)        # lane padding
    pnr = _round_up(N, 8)         # sublane padding
    per_slice = (2 * pj * pn * 4        # ypred block, double-buffered
                 + 2 * 8 * pn * 4       # xyz (3 -> 8 sublanes), double-buffered
                 + 10 * pnr * pn * 4    # live (N, N) temporaries (e2, masks, iota, onehot, ...)
                 + 2 * pj * pn * 4)     # h and a*h
    tb = max(1, budget_bytes // per_slice)
    return int(min(tb, BL))


@functools.partial(jax.jit, static_argnames=("tb", "per_step_partials", "vmem_limit"))
def _loss_impl(ypred, xyz, *, tb, per_step_partials, vmem_limit):
    B, L, J, N = ypred.shape
    BL = B * L

    # Cheap glue: contiguous reshapes + one tiny (BL, 3, N) transpose.
    ypred_jn = ypred.reshape(BL, J, N).astype(jnp.float32)               # (BL, J, N)
    xyz_3n = jnp.transpose(xyz.reshape(BL, N, 3).astype(jnp.float32),
                           (0, 2, 1))                                    # (BL, 3, N)

    TB = max(1, min(tb, BL))
    G = pl.cdiv(BL, TB)
    pad = G * TB - BL
    if pad:
        # Zero slices contribute exactly 0 to the sum (ypred == 0 -> a*h == 0).
        ypred_jn = jnp.pad(ypred_jn, ((0, pad), (0, 0), (0, 0)))
        xyz_3n = jnp.pad(xyz_3n, ((0, pad), (0, 0), (0, 0)))

    if per_step_partials:
        out_shape = jax.ShapeDtypeStruct((G, 1), jnp.float32)
        out_spec = pl.BlockSpec((1, 1), lambda g: (g, 0))
        semantics = ("parallel",)
    else:
        out_shape = jax.ShapeDtypeStruct((1, 1), jnp.float32)
        out_spec = pl.BlockSpec((1, 1), lambda g: (0, 0))
        semantics = ("arbitrary",)

    partials = pl.pallas_call(
        _make_loss_kernel(accumulate=not per_step_partials),
        out_shape=out_shape,
        grid_spec=pltpu.PrefetchScalarGridSpec(
            num_scalar_prefetch=0,
            grid=(G,),
            in_specs=[
                pl.BlockSpec((TB, J, N), lambda g: (g, 0, 0)),
                pl.BlockSpec((TB, 3, N), lambda g: (g, 0, 0)),
            ],
            out_specs=out_spec,
        ),
        compiler_params=pltpu.CompilerParams(
            dimension_semantics=semantics,
            vmem_limit_bytes=vmem_limit,
        ),
    )(ypred_jn, xyz_3n)

    return jnp.sum(partials) / jnp.float32(BL * N)


def class_logit_contrastive_loss(ypred, xyz, *, tb=None, per_step_partials=None):
    """Pallas implementation of ClassLogitContrastiveLoss.forward (mean)."""
    B, L, J, N = ypred.shape
    BL = B * L

    vmem_cap = _vmem_capacity_bytes()
    # Raise the scoped VMEM limit (defaults are 16/32 MiB) but stay well under
    # physical capacity; v7x (64 MiB) automatically gets ~half the v6e budget.
    vmem_limit = int(min(0.75 * vmem_cap, 100 * 2 ** 20))

    if per_step_partials is None:
        per_step_partials = _is_megacore()
    if tb is None:
        tb = _auto_tb(J, N, BL, budget_bytes=vmem_limit // 2)
    tb = int(max(1, min(int(tb), BL)))

    return _loss_impl(ypred, xyz, tb=tb,
                      per_step_partials=bool(per_step_partials),
                      vmem_limit=vmem_limit)


def _reference_loss(ypred, xyz):
    """Pure-JAX reference mirroring the PyTorch forward."""
    B, L, J, N = ypred.shape
    xyz_ = xyz.reshape(B * L, N, 3)
    diff = xyz_[:, :, None, :] - xyz_[:, None, :, :]
    dist = jnp.sqrt(jnp.sum(diff * diff, axis=-1))
    idx_max = jnp.argmax(dist, axis=2)
    dist_m = jnp.where(dist == 0.0, 1e6, dist)
    idx_min = jnp.argmin(dist_m, axis=2)
    yp = jnp.transpose(ypred, (0, 1, 3, 2)).reshape(B * L, N, J)
    sim = jnp.einsum("bnj,bmj->bnm", yp, yp)
    s_max = jnp.take_along_axis(sim, idx_max[..., None], axis=2)[..., 0]
    s_min = jnp.take_along_axis(sim, idx_min[..., None], axis=2)[..., 0]
    return jnp.mean(s_max - s_min)


if __name__ == "__main__":
    # ClassLogitContrastiveLoss has no learnable parameters; reduction='batchmean'
    # is stored but forward() uses a plain mean, which is what we implement.
    B, L, J, N = 2, 2, 16, 8
    key = jax.random.PRNGKey(0)
    k1, k2 = jax.random.split(key)
    ypred = jax.random.normal(k1, (B, L, J, N), dtype=jnp.float32)
    xyz = jax.random.normal(k2, (B, L, N, 3), dtype=jnp.float32)

    ref = jax.block_until_ready(_reference_loss(ypred, xyz))

    # Default path (auto TB, generation-aware output layout).
    loss = jax.block_until_ready(class_logit_contrastive_loss(ypred, xyz))
    assert jnp.allclose(loss, ref, atol=1e-4, rtol=1e-4), (loss, ref)

    # Padding path (TB does not divide BL) with the resident accumulator output.
    loss_pad = jax.block_until_ready(
        class_logit_contrastive_loss(ypred, xyz, tb=3, per_step_partials=False))
    assert jnp.allclose(loss_pad, ref, atol=1e-4, rtol=1e-4), (loss_pad, ref)

    # Megacore-style per-step partials ("parallel" grid axis).
    loss_ps = jax.block_until_ready(
        class_logit_contrastive_loss(ypred, xyz, tb=2, per_step_partials=True))
    assert jnp.allclose(loss_ps, ref, atol=1e-4, rtol=1e-4), (loss_ps, ref)

    print("KERNEL_OK")
</pallas_src>

<mosaic_0001>
module attributes {stable_mosaic.version = 11 : i64} {
  func.func @kernel(%arg0: i32, %arg1: memref<4x16x8xf32, #tpu.memory_space<vmem>>, %arg2: memref<4x3x8xf32, #tpu.memory_space<vmem>>, %arg3: memref<1x1xf32, #tpu.memory_space<vmem>>) attributes {dimension_semantics = [#tpu.dimension_semantics<arbitrary>], iteration_bounds = array<i64: 1>, scalar_prefetch = 0 : i64, scratch_operands = 0 : i64, tpu.core_type = #tpu.core_type<tc>, window_params = [{transform_indices = @transform_0, window_bounds = array<i64: 4, 16, 8>}, {transform_indices = @transform_1, window_bounds = array<i64: 4, 3, 8>}, {pipeline_mode = #tpu.pipeline_mode<synchronous>, transform_indices = @transform_2, window_bounds = array<i64: 1, 1>}]} {
    %c0 = arith.constant 0 : index
    %c0_0 = arith.constant 0 : index
    %c0_1 = arith.constant 0 : index
    %0 = vector.load %arg1[%c0, %c0_0, %c0_1] : memref<4x16x8xf32, #tpu.memory_space<vmem>>, vector<4x16x8xf32>
    %c0_2 = arith.constant 0 : index
    %c0_3 = arith.constant 0 : index
    %c0_4 = arith.constant 0 : index
    %1 = vector.load %arg2[%c0_2, %c0_3, %c0_4] : memref<4x3x8xf32, #tpu.memory_space<vmem>>, vector<4x3x8xf32>
    %cst = arith.constant dense<0.000000e+00> : vector<4x8x8xf32>
    %2 = tpu.matmul %1, %1, %cst {dimension_numbers = #tpu.dot_dimension_numbers<[1], [1], [2], [2], [0, 0, 0, 2, 1, 2], [0], [0]>} : vector<4x3x8xf32>, vector<4x3x8xf32>, vector<4x8x8xf32> -> vector<4x8x8xf32>
    %3 = arith.mulf %1, %1 : vector<4x3x8xf32>
    %cst_5 = arith.constant dense<0.000000e+00> : vector<4x8xf32>
    %4 = vector.multi_reduction <add>, %3, %cst_5 [1] : vector<4x3x8xf32> to vector<4x8xf32>
    %5 = vector.shape_cast %4 : vector<4x8xf32> to vector<4x1x8xf32>
    %cst_6 = arith.constant 2.000000e+00 : f32
    %6 = vector.broadcast %cst_6 : f32 to vector<4x8x8xf32>
    %7 = arith.mulf %6, %2 : vector<4x8x8xf32>
    %8 = vector.broadcast %5 : vector<4x1x8xf32> to vector<4x8x8xf32>
    %9 = arith.subf %8, %7 : vector<4x8x8xf32>
    %10 = tpu.iota {dimensions = array<i32: 2>} : vector<4x8x8xi32>
    %11 = tpu.iota {dimensions = array<i32: 1>} : vector<4x8x8xi32>
    %cst_7 = arith.constant dense<0xFF800000> : vector<4x8xf32>
    %12 = vector.multi_reduction <maximumf>, %9, %cst_7 [2] : vector<4x8x8xf32> to vector<4x8xf32>
    %13 = vector.shape_cast %12 : vector<4x8xf32> to vector<4x8x1xf32>
    %14 = vector.broadcast %13 : vector<4x8x1xf32> to vector<4x8x8xf32>
    %15 = arith.cmpf oeq, %9, %14 : vector<4x8x8xf32>
    %c8_i32 = arith.constant 8 : i32
    %16 = vector.broadcast %c8_i32 : i32 to vector<4x8x8xi32>
    %17 = arith.select %15, %10, %16 : vector<4x8x8xi1>, vector<4x8x8xi32>
    %cst_8 = arith.constant dense<2147483647> : vector<4x8xi32>
    %18 = vector.multi_reduction <minsi>, %17, %cst_8 [2] : vector<4x8x8xi32> to vector<4x8xi32>
    %19 = vector.shape_cast %18 : vector<4x8xi32> to vector<4x8x1xi32>
    %20 = arith.cmpi eq, %11, %10 : vector<4x8x8xi32>
    %cst_9 = arith.constant 0x7F800000 : f32
    %21 = vector.broadcast %cst_9 : f32 to vector<4x8x8xf32>
    %22 = arith.select %20, %21, %9 : vector<4x8x8xi1>, vector<4x8x8xf32>
    %cst_10 = arith.constant dense<0x7F800000> : vector<4x8xf32>
    %23 = vector.multi_reduction <minimumf>, %22, %cst_10 [2] : vector<4x8x8xf32> to vector<4x8xf32>
    %24 = vector.shape_cast %23 : vector<4x8xf32> to vector<4x8x1xf32>
    %25 = vector.broadcast %24 : vector<4x8x1xf32> to vector<4x8x8xf32>
    %26 = arith.cmpf oeq, %22, %25 : vector<4x8x8xf32>
    %c8_i32_11 = arith.constant 8 : i32
    %27 = vector.broadcast %c8_i32_11 : i32 to vector<4x8x8xi32>
    %28 = arith.select %26, %10, %27 : vector<4x8x8xi1>, vector<4x8x8xi32>
    %cst_12 = arith.constant dense<2147483647> : vector<4x8xi32>
    %29 = vector.multi_reduction <minsi>, %28, %cst_12 [2] : vector<4x8x8xi32> to vector<4x8xi32>
    %30 = vector.shape_cast %29 : vector<4x8xi32> to vector<4x8x1xi32>
    %31 = vector.broadcast %19 : vector<4x8x1xi32> to vector<4x8x8xi32>
    %32 = arith.cmpi eq, %10, %31 : vector<4x8x8xi32>
    %33 = arith.extui %32 : vector<4x8x8xi1> to vector<4x8x8xi32>
    %34 = arith.sitofp %33 : vector<4x8x8xi32> to vector<4x8x8xf32>
    %35 = vector.broadcast %30 : vector<4x8x1xi32> to vector<4x8x8xi32>
    %36 = arith.cmpi eq, %10, %35 : vector<4x8x8xi32>
    %37 = arith.extui %36 : vector<4x8x8xi1> to vector<4x8x8xi32>
    %38 = arith.sitofp %37 : vector<4x8x8xi32> to vector<4x8x8xf32>
    %39 = arith.subf %34, %38 : vector<4x8x8xf32>
    %cst_13 = arith.constant dense<0.000000e+00> : vector<4x16x8xf32>
    %40 = tpu.matmul %0, %39, %cst_13 {dimension_numbers = #tpu.dot_dimension_numbers<[2], [2], [1], [1], [0, 0, 0, 1, 1, 1], [0], [0]>} : vector<4x16x8xf32>, vector<4x8x8xf32>, vector<4x16x8xf32> -> vector<4x16x8xf32>
    %41 = arith.mulf %0, %40 : vector<4x16x8xf32>
    %42 = vector.shape_cast %41 : vector<4x16x8xf32> to vector<1x4x16x8xf32>
    %cst_14 = arith.constant dense<0.000000e+00> : vector<1xf32>
    %43 = vector.multi_reduction <add>, %42, %cst_14 [1, 2, 3] : vector<1x4x16x8xf32> to vector<1xf32>
    %44 = vector.shape_cast %43 : vector<1xf32> to vector<1x1x1x1xf32>
    %45 = vector.extract %44[0, 0, 0, 0] : f32 from vector<1x1x1x1xf32>
    %c0_i32 = arith.constant 0 : i32
    %46 = arith.cmpi eq, %arg0, %c0_i32 : i32
    %47 = arith.extui %46 : i1 to i32
    %c0_i32_15 = arith.constant 0 : i32
    %48 = arith.cmpi ne, %47, %c0_i32_15 : i32
    scf.if %48 {
      %cst_20 = arith.constant 0.000000e+00 : f32
      %53 = vector.broadcast %cst_20 : f32 to vector<1x1xf32>
      %c0_21 = arith.constant 0 : index
      %c0_22 = arith.constant 0 : index
      %54 = vector.load %arg3[%c0_21, %c0_22] : memref<1x1xf32, #tpu.memory_space<vmem>>, vector<1x1xf32>
      tpu.vector_store %arg3[%c0_21, %c0_22], %53 {strides = array<i32>} : memref<1x1xf32, #tpu.memory_space<vmem>>, vector<1x1xf32>,
    } else {
    }
    %c0_16 = arith.constant 0 : index
    %c0_17 = arith.constant 0 : index
    %49 = vector.load %arg3[%c0_16, %c0_17] : memref<1x1xf32, #tpu.memory_space<vmem>>, vector<1x1xf32>
    %50 = vector.broadcast %45 : f32 to vector<1x1xf32>
    %51 = arith.addf %49, %50 : vector<1x1xf32>
    %c0_18 = arith.constant 0 : index
    %c0_19 = arith.constant 0 : index
    %52 = vector.load %arg3[%c0_18, %c0_19] : memref<1x1xf32, #tpu.memory_space<vmem>>, vector<1x1xf32>
    tpu.vector_store %arg3[%c0_18, %c0_19], %51 {strides = array<i32>} : memref<1x1xf32, #tpu.memory_space<vmem>>, vector<1x1xf32>,
    return
  }
  func.func @transform_0(%arg0: i32) -> (i32, i32, i32) {
    %c0_i32 = arith.constant 0 : i32
    %c0_i32_0 = arith.constant 0 : i32
    %c0_i32_1 = arith.constant 0 : i32
    return %arg0, %c0_i32, %c0_i32_0 : i32, i32, i32
  }
  func.func @transform_1(%arg0: i32) -> (i32, i32, i32) {
    %c0_i32 = arith.constant 0 : i32
    %c0_i32_0 = arith.constant 0 : i32
    %c0_i32_1 = arith.constant 0 : i32
    return %arg0, %c0_i32, %c0_i32_0 : i32, i32, i32
  }
  func.func @transform_2(%arg0: i32) -> (i32, i32) {
    %c0_i32 = arith.constant 0 : i32
    %c0_i32_0 = arith.constant 0 : i32
    %c0_i32_1 = arith.constant 0 : i32
    return %c0_i32, %c0_i32_0 : i32, i32
  }
}

</mosaic_0001>

<bundles_post_ra>
// kernel: _loss_impl.1
= control target key start
LH: loop header
LB: loop body
LE: loop exit
PB: predicated region body
PF: predicated region fallthrough
CT: control target
= control target key end

     0   :  { %v1205_v4 = vmov 0.0   ;;  %vm60_vm0 = vcmask 1042432   ;;  %s1364_s0 = inlined_call_operand.vmem [shape: f32[4,16,8], index: 0, kind: input, shape index: {}]   ;;  %s1365_s1 = inlined_call_operand.vmem [shape: f32[4,3,8], index: 1, kind: input, shape index: {}]   ;;  %s1366_s2 = inlined_call_operand.hbm [shape: f32[1,1], index: 2, kind: output, shape index: {}]  }
   0x1   :  { %v20_v0 = vld [vmem:[%s1365_s1] sm:$0x7]  ;;  %v22_v1 = vld [vmem:[%s1365_s1 + $0x8] sm:$0x7]  ;;  %v21_v2 = vld [vmem:[%s1365_s1 + $0x4] sm:$0x7]  ;;  %1138 = vmatprep.subr.mxu0 %v1205_v4  ;;  %1143 = vmatprep.subr.mxu1 %v1205_v4 }
   0x2   :  { %24 = vxpose.xlu0.b32.start.end [1/1] (short) (narrow) %v20_v0, 8  ;;  %242 = vxpose.xlu1.b32.start.end [1/1] (short) (narrow) %v22_v1, 8  ;;  %v23_v3 = vld [vmem:[%s1365_s1 + $0xc] sm:$0x7] }
   0x3   :  { %7 = vsyncpa [#allocation3], 0  ;;  %vm1206_vm1 = vmmov 0   ;;  %1139 = vmatpush3.msk.msra.mxu0 %vm60_vm0, %v20_v0  ;;  %1144 = vmatpush3.msk.msra.mxu1 %vm60_vm0, %v21_v2  ;;  %vm56_vm2 = vcmask 23552   ;;  %v458_v9 = vmul.f32 %v20_v0, %v20_v0  ;;  %vm462_vm3 = vcmask 59392  }
   0x4   :  { %1140 = vmatprep.mubr.msk.f32.mxu0 %vm1206_vm1, %v1205_v4  ;;  %1148 = vmatprep.subr.mxu0 %v1205_v4  ;;  %v460_v11 = vmul.f32 %v22_v1, %v22_v1  ;;  %v459_v12 = vmul.f32 %v21_v2, %v21_v2  ;;  %v461_v16 = vmul.f32 %v23_v3, %v23_v3  ;;  %v499_v33 = vlaneseq }
   0x5   :  { %1145 = vmatprep.mubr.msk.f32.mxu1 %vm1206_vm1, %v1205_v4  ;;  %1153 = vmatprep.subr.mxu1 %v1205_v4  ;;  %v463_v10 = vsel %vm462_vm3, %v458_v9, 0.0  ;;  %vm503_vm4 = vcmask 64512  }
   0x6   :  { %134 = vxpose.xlu0.b32.start.end [1/1] (short) (narrow) %v21_v2, 8  ;;  %350 = vxpose.xlu1.b32.start.end [1/1] (short) (narrow) %v23_v3, 8  ;;  %v464_v13 = vrot.slane %v463_v10, 4  ;;  %v477_v14 = vsel %vm462_vm3, %v460_v11, 0.0  ;;  %v470_v15 = vsel %vm462_vm3, %v459_v12, 0.0  ;;  %v484_v20 = vsel %vm462_vm3, %v461_v16, 0.0 }
   0x7   :  { %v478_v18 = vrot.slane %v477_v14, 4  ;;  %v471_v19 = vrot.slane %v470_v15, 4  ;;  %v485_v23 = vrot.slane %v484_v20, 4  ;;  %v1251_v41 = vand.u32 127, %v499_v33 }
   0x8   :  { %v465_v17 = vadd.f32 %v464_v13, %v463_v10  ;;  %v502_v42 = vshrl.u32 %v499_v33, 7 }
   0x9   :  { %v479_v21 = vadd.f32 %v478_v18, %v477_v14  ;;  %v472_v22 = vadd.f32 %v471_v19, %v470_v15  ;;  %v486_v25 = vadd.f32 %v485_v23, %v484_v20 }
   0xa   :  { %v466_v24 = vrot.slane %v465_v17, 2  ;;  %vm584_vm5 = vcmp.eq.s32.totalorder %v502_v42, %v1251_v41 }
   0xb   :  { %v473_v27 = vrot.slane %v472_v22, 2  ;;  %v480_v28 = vrot.slane %v479_v21, 2  ;;  %v487_v32 = vrot.slane %v486_v25, 2 }
   0xc   :  { %v467_v26 = vadd.f32 %v466_v24, %v465_v17 }
   0xd   :  { %v474_v30 = vadd.f32 %v473_v27, %v472_v22  ;;  %v481_v31 = vadd.f32 %v480_v28, %v479_v21  ;;  %v488_v37 = vadd.f32 %v487_v32, %v486_v25 }
   0xe   :  { %v468_v29 = vrot.slane %v467_v26, 1 }
   0xf   :  { %v475_v35 = vrot.slane %v474_v30, 1  ;;  %v482_v36 = vrot.slane %v481_v31, 1  ;;  %v489_v46 = vrot.slane %v488_v37, 1 }
  0x10   :  { %v469_v34 = vadd.f32 %v468_v29, %v467_v26 }
  0x11   :  { %v476_v44 = vadd.f32 %v475_v35, %v474_v30  ;;  %v483_v45 = vadd.f32 %v482_v36, %v481_v31  ;;  %v490_v56 = vadd.f32 %v489_v46, %v488_v37 }
  0x7e   :  { %v40_v5 = vpop.trf.xlu0  ;;  %v258_v6 = vpop.trf.xlu1 }
  0x7f   :  { %1141 = vmatmul.mubr.msk.f32.vlgmr.msra.gmra.mxu0 %vm56_vm2, %v40_v5 }
  0x80   :  { %1149 = vmatpush3.msk.msra.mxu0 %vm60_vm0, %v22_v1  ;;  %1150 = vmatprep.mubr.msk.f32.mxu0 %vm1206_vm1, %v1205_v4 }
  0x82   :  { %v150_v7 = vpop.trf.xlu0  ;;  %v366_v8 = vpop.trf.xlu1 }
  0x83   :  { %1146 = vmatmul.mubr.msk.f32.vlgmr.msra.gmra.mxu1 %vm56_vm2, %v150_v7  ;;  %1151 = vmatmul.mubr.msk.f32.vlgmr.msra.gmra.mxu0 %vm56_vm2, %v258_v6 }
  0x84   :  { %1154 = vmatpush3.msk.msra.mxu1 %vm60_vm0, %v23_v3  ;;  %1155 = vmatprep.mubr.msk.f32.mxu1 %vm1206_vm1, %v1205_v4 }
  0x87   :  { %1156 = vmatmul.mubr.msk.f32.vlgmr.msra.gmra.mxu1 %vm56_vm2, %v366_v8 }
 0x13f   :  { %v130_v38 = vpop.f32.mrf.mxu0 }
 0x140   :  { %v491_v39 = vmul.f32 2.0, %v130_v38 }
 0x141   :  { %v1142_v40 = vpop.f32.mrf.mxu0 }
 0x142   :  { %v495_v43 = vsub.f32 %v469_v34, %v491_v39 }
 0x143   :  { %v238_v47 = vpop.f32.mrf.mxu1  ;;  %v346_v48 = vpop.f32.mrf.mxu0 }
 0x144   :  { %v492_v49 = vmul.f32 2.0, %v238_v47  ;;  %v493_v50 = vmul.f32 2.0, %v346_v48  ;;  %v504_v51 = vsel %vm503_vm4, %v495_v43, -inf  ;;  %v585_v61 = vsel %vm584_vm5, inf, %v495_v43 }
 0x145   :  { %v1147_v52 = vpop.f32.mrf.mxu1  ;;  %505 = vmax.xlane.f32.xlu0 %v504_v51  ;;  %v1152_v53 = vpop.f32.mrf.mxu0  ;;  %v589_v0 = vsel %vm503_vm4, %v585_v61, inf }
 0x146   :  { %v496_v54 = vsub.f32 %v476_v44, %v492_v49  ;;  %v497_v55 = vsub.f32 %v483_v45, %v493_v50 }
 0x147   :  { %v454_v57 = vpop.f32.mrf.mxu1 }
 0x148   :  { %v494_v58 = vmul.f32 2.0, %v454_v57  ;;  %v507_v59 = vsel %vm503_vm4, %v496_v54, -inf  ;;  %v510_v60 = vsel %vm503_vm4, %v497_v55, -inf  ;;  %v586_v2 = vsel %vm584_vm5, inf, %v496_v54 }
 0x149   :  { %508 = vmax.xlane.f32.xlu1 %v507_v59  ;;  %511 = vmax.xlane.f32.xlu0 %v510_v60  ;;  %v1157_v62 = vpop.f32.mrf.mxu1  ;;  %v587_v3 = vsel %vm584_vm5, inf, %v497_v55  ;;  %v592_v5 = vsel %vm503_vm4, %v586_v2, inf }
 0x14a   :  { %v498_v63 = vsub.f32 %v490_v56, %v494_v58  ;;  %v595_v6 = vsel %vm503_vm4, %v587_v3, inf }
 0x14c   :  { %v513_v1 = vsel %vm503_vm4, %v498_v63, -inf  ;;  %v588_v7 = vsel %vm584_vm5, inf, %v498_v63 }
 0x14d   :  { %590 = vmin.xlane.f32.xlu1 %v589_v0  ;;  %514 = vmax.xlane.f32.xlu0 %v513_v1  ;;  %v598_v8 = vsel %vm503_vm4, %v588_v7, inf }
 0x151   :  { %593 = vmin.xlane.f32.xlu1 %v592_v5 }
 0x155   :  { %596 = vmin.xlane.f32.xlu1 %v595_v6 }
 0x159   :  { %599 = vmin.xlane.f32.xlu1 %v598_v8 }
 0x1ce   :  { %v506_v9 = vpop.xlane.xlu0 %505 }
 0x1cf   :  { %vm516_vm6 = vcmp.eq.f32.partialorder %v495_v43, %v506_v9 }
 0x1d0   :  { %v520_v10 = vsel %vm516_vm6, %v1251_v41, 8 }
 0x1d1   :  { %v524_v11 = vsel %vm503_vm4, %v520_v10, 2147483647 }
 0x1d2   :  { %v509_v12 = vpop.xlane.xlu1 %508  ;;  %v512_v13 = vpop.xlane.xlu0 %511  ;;  %v526_v14 = vshra.s32 %v524_v11, 16  ;;  %v525_v50 = vand.u32 65535, %v524_v11 }
 0x1d3   :  { %vm517_vm7 = vcmp.eq.f32.partialorder %v496_v54, %v509_v12  ;;  %vm518_vm8 = vcmp.eq.f32.partialorder %v497_v55, %v512_v13 }
 0x1d4   :  { %v521_v15 = vsel %vm517_vm7, %v1251_v41, 8  ;;  %v522_v16 = vsel %vm518_vm8, %v1251_v41, 8  ;;  %v528_v17 = vcvt.s32.f32 %v526_v14  ;;  %v527_v52 = vcvt.s32.f32 %v525_v50 }
 0x1d5   :  { %v539_v18 = vsel %vm503_vm4, %v521_v15, 2147483647  ;;  %v554_v19 = vsel %vm503_vm4, %v522_v16, 2147483647 }
 0x1d6   :  { %v591_v20 = vpop.xlane.xlu1 %590  ;;  %529 = vmin.xlane.f32.xlu0 %v528_v17  ;;  %v515_v21 = vpop.xlane.xlu0 %514  ;;  %v541_v22 = vshra.s32 %v539_v18, 16  ;;  %v556_v26 = vshra.s32 %v554_v19, 16  ;;  %v540_v53 = vand.u32 65535, %v539_v18  ;;  %v555_v58 = vand.u32 65535, %v554_v19  ;;  %v1289_v19 = vld [vmem:[%s1364_s0] sm:$0xff] }
 0x1d7   :  { %vm601_vm9 = vcmp.eq.f32.partialorder %v585_v61, %v591_v20  ;;  %vm519_vm10 = vcmp.eq.f32.partialorder %v498_v63, %v515_v21  ;;  %1160 = vmatprep.mubr.msk.f32.mxu0 %vm503_vm4, %v1289_v19  ;;  %v1296_v20 = vld [vmem:[%s1364_s0 + $0x10] sm:$0xff] }
 0x1d8   :  { %v605_v23 = vsel %vm601_vm9, %v1251_v41, 8  ;;  %v523_v24 = vsel %vm519_vm10, %v1251_v41, 8  ;;  %v543_v25 = vcvt.s32.f32 %v541_v22  ;;  %v558_v33 = vcvt.s32.f32 %v556_v26  ;;  %1165 = vmatprep.mubr.msk.f32.mxu1 %vm503_vm4, %v1296_v20 }
 0x1d9   :  { %v609_v27 = vsel %vm503_vm4, %v605_v23, 2147483647  ;;  %v569_v28 = vsel %vm503_vm4, %v523_v24, 2147483647  ;;  %v542_v56 = vcvt.s32.f32 %v540_v53  ;;  %v557_v63 = vcvt.s32.f32 %v555_v58 }
 0x1da   :  { %v594_v29 = vpop.xlane.xlu1 %593  ;;  %544 = vmin.xlane.f32.xlu0 %v543_v25  ;;  %v611_v30 = vshra.s32 %v609_v27, 16  ;;  %v571_v34 = vshra.s32 %v569_v28, 16  ;;  %v610_v57 = vand.u32 65535, %v609_v27  ;;  %v570_v1 = vand.u32 65535, %v569_v28 }
 0x1db   :  { %vm602_vm11 = vcmp.eq.f32.partialorder %v586_v2, %v594_v29 }
 0x1dc   :  { %v606_v31 = vsel %vm602_vm11, %v1251_v41, 8  ;;  %v613_v32 = vcvt.s32.f32 %v611_v30  ;;  %v573_v40 = vcvt.s32.f32 %v571_v34  ;;  %v612_v62 = vcvt.s32.f32 %v610_v57 }
 0x1dd   :  { %v624_v35 = vsel %vm503_vm4, %v606_v31, 2147483647  ;;  %v572_v8 = vcvt.s32.f32 %v570_v1  ;;  %v16_v1 = vld [vmem:[%s1364_s0 + $0x20] sm:$0xff] }
 0x1de   :  { %614 = vmin.xlane.f32.xlu1 %v613_v32  ;;  %v597_v36 = vpop.xlane.xlu1 %596  ;;  %559 = vmin.xlane.f32.xlu0 %v558_v33  ;;  %v626_v37 = vshra.s32 %v624_v35, 16  ;;  %v625_v0 = vand.u32 65535, %v624_v35 }
 0x1df   :  { %vm603_vm12 = vcmp.eq.f32.partialorder %v587_v3, %v597_v36 }
 0x1e0   :  { %v607_v38 = vsel %vm603_vm12, %v1251_v41, 8  ;;  %v628_v39 = vcvt.s32.f32 %v626_v37 }
 0x1e1   :  { %v639_v42 = vsel %vm503_vm4, %v607_v38, 2147483647 }
 0x1e2   :  { %629 = vmin.xlane.f32.xlu1 %v628_v39  ;;  %v600_v43 = vpop.xlane.xlu1 %599  ;;  %574 = vmin.xlane.f32.xlu0 %v573_v40  ;;  %v641_v44 = vshra.s32 %v639_v42, 16  ;;  %v640_v9 = vand.u32 65535, %v639_v42 }
 0x1e3   :  { %vm604_vm13 = vcmp.eq.f32.partialorder %v588_v7, %v600_v43  ;;  %v627_v7 = vcvt.s32.f32 %v625_v0 }
 0x1e4   :  { %v608_v45 = vsel %vm604_vm13, %v1251_v41, 8  ;;  %v643_v46 = vcvt.s32.f32 %v641_v44  ;;  %v642_v13 = vcvt.s32.f32 %v640_v9 }
 0x1e5   :  { %v654_v47 = vsel %vm503_vm4, %v608_v45, 2147483647 }
 0x1e6   :  { %644 = vmin.xlane.f32.xlu1 %v643_v46  ;;  %v656_v48 = vshra.s32 %v654_v47, 16  ;;  %v655_v14 = vand.u32 65535, %v654_v47 }
 0x1e8   :  { %v658_v49 = vcvt.s32.f32 %v656_v48 }
 0x1ea   :  { %659 = vmin.xlane.f32.xlu1 %v658_v49 }
 0x25f   :  { %v530_v51 = vpop.xlane.xlu0 %529 }
 0x260   :  { %vm531_vm14 = vcmp.eq.f32.partialorder %v528_v17, %v530_v51  ;;  %v657_v17 = vcvt.s32.f32 %v655_v14  ;;  %v536_v22 = vcvt.f32.s32 %v530_v51  ;;  %v17_v14 = vld [vmem:[%s1364_s0 + $0x28] sm:$0xff] }
 0x261   :  { %v532_v54 = vsel %vm531_vm14, %v527_v52, inf }
 0x262   :  { %533 = vmin.xlane.f32.xlu0 %v532_v54  ;;  %v537_v26 = vshll.u32 %v536_v22, 16 }
 0x263   :  { %v545_v55 = vpop.xlane.xlu0 %544 }
 0x264   :  { %vm546_vm15 = vcmp.eq.f32.partialorder %v543_v25, %v545_v55  ;;  %v551_v24 = vcvt.f32.s32 %v545_v55 }
 0x265   :  { %v547_v59 = vsel %vm546_vm15, %v542_v56, inf  ;;  %vm1069_vm15 = vcmask 0  }
 0x266   :  { %548 = vmin.xlane.f32.xlu0 %v547_v59  ;;  %v552_v30 = vshll.u32 %v551_v24, 16  ;;  %1070 = vst.msk [vmem:[#allocation2] sm:$0x1] %vm1069_vm15, %v1205_v4 }
 0x267   :  { %v615_v60 = vpop.xlane.xlu1 %614  ;;  %v560_v61 = vpop.xlane.xlu0 %559 }
 0x268   :  { %vm616_vm0 = vcmp.eq.f32.partialorder %v613_v32, %v615_v60  ;;  %vm561_vm1 = vcmp.eq.f32.partialorder %v558_v33, %v560_v61  ;;  %v621_v27 = vcvt.f32.s32 %v615_v60  ;;  %v566_v31 = vcvt.f32.s32 %v560_v61  ;;  %v13_v61 = vld [vmem:[%s1364_s0 + $0x8] sm:$0xff] }
 0x269   :  { %v617_v2 = vsel %vm616_vm0, %v612_v62, inf  ;;  %v562_v3 = vsel %vm561_vm1, %v557_v63, inf }
 0x26a   :  { %618 = vmin.xlane.f32.xlu1 %v617_v2  ;;  %563 = vmin.xlane.f32.xlu0 %v562_v3  ;;  %v622_v34 = vshll.u32 %v621_v27, 16 }
 0x26b   :  { %v630_v5 = vpop.xlane.xlu1 %629  ;;  %v575_v6 = vpop.xlane.xlu0 %574 }
 0x26c   :  { %vm631_vm2 = vcmp.eq.f32.partialorder %v628_v39, %v630_v5  ;;  %vm576_vm3 = vcmp.eq.f32.partialorder %v573_v40, %v575_v6  ;;  %v636_v35 = vcvt.f32.s32 %v630_v5  ;;  %v567_v40 = vshll.u32 %v566_v31, 16 }
 0x26d   :  { %v632_v10 = vsel %vm631_vm2, %v627_v7, inf  ;;  %v577_v11 = vsel %vm576_vm3, %v572_v8, inf  ;;  %v581_v42 = vcvt.f32.s32 %v575_v6  ;;  %v15_v8 = vld [vmem:[%s1364_s0 + $0x18] sm:$0xff] }
 0x26e   :  { %633 = vmin.xlane.f32.xlu1 %v632_v10  ;;  %578 = vmin.xlane.f32.xlu0 %v577_v11  ;;  %v637_v45 = vshll.u32 %v636_v35, 16  ;;  %v18_v11 = vld [vmem:[%s1364_s0 + $0x30] sm:$0xff] }
 0x26f   :  { %v645_v12 = vpop.xlane.xlu1 %644  ;;  %v582_v54 = vshll.u32 %v581_v42, 16 }
 0x270   :  { %vm646_vm5 = vcmp.eq.f32.partialorder %v643_v46, %v645_v12  ;;  %v651_v46 = vcvt.f32.s32 %v645_v12 }
 0x271   :  { %v647_v15 = vsel %vm646_vm5, %v642_v13, inf }
 0x272   :  { %648 = vmin.xlane.f32.xlu1 %v647_v15  ;;  %v652_v56 = vshll.u32 %v651_v46, 16 }
 0x273   :  { %v660_v16 = vpop.xlane.xlu1 %659 }
 0x274   :  { %vm661_vm6 = vcmp.eq.f32.partialorder %v658_v49, %v660_v16  ;;  %v666_v57 = vcvt.f32.s32 %v660_v16 }
 0x275   :  { %v662_v18 = vsel %vm661_vm6, %v657_v17, inf }
 0x276   :  { %663 = vmin.xlane.f32.xlu1 %v662_v18  ;;  %v667_v3 = vshll.u32 %v666_v57, 16 }
 0x2eb   :  { %v534_v21 = vpop.xlane.xlu0 %533 }
 0x2ec   :  { %v535_v23 = vcvt.f32.s32 %v534_v21 }
 0x2ee   :  { %v538_v29 = vadd.s32 %v537_v26, %v535_v23 }
 0x2ef   :  { %v549_v25 = vpop.xlane.xlu0 %548 }
 0x2f0   :  { %v550_v28 = vcvt.f32.s32 %v549_v25  ;;  %vm669_vm7 = vcmp.eq.s32.totalorder %v1251_v41, %v538_v29 }
 0x2f1   :  { %v1098_v48 = vsel %vm669_vm7, 1.0, %v1205_v4 }
 0x2f2   :  { %v553_v37 = vadd.s32 %v552_v30, %v550_v28 }
 0x2f3   :  { %v619_v32 = vpop.xlane.xlu1 %618  ;;  %v564_v33 = vpop.xlane.xlu0 %563 }
 0x2f4   :  { %v620_v36 = vcvt.f32.s32 %v619_v32  ;;  %v565_v39 = vcvt.f32.s32 %v564_v33  ;;  %vm670_vm9 = vcmp.eq.s32.totalorder %v1251_v41, %v553_v37 }
 0x2f5   :  { %v1099_v59 = vsel %vm670_vm9, 1.0, %v1205_v4 }
 0x2f6   :  { %v623_v38 = vadd.s32 %v622_v34, %v620_v36  ;;  %v568_v51 = vadd.s32 %v567_v40, %v565_v39 }
 0x2f7   :  { %v634_v43 = vpop.xlane.xlu1 %633  ;;  %v579_v44 = vpop.xlane.xlu0 %578 }
 0x2f8   :  { %vm681_vm8 = vcmp.eq.s32.totalorder %v1251_v41, %v623_v38  ;;  %v635_v47 = vcvt.f32.s32 %v634_v43  ;;  %v580_v53 = vcvt.f32.s32 %v579_v44  ;;  %vm671_vm11 = vcmp.eq.s32.totalorder %v1251_v41, %v568_v51 }
 0x2f9   :  { %v1102_v49 = vsel %vm681_vm8, 1.0, %v1205_v4  ;;  %v1100_v6 = vsel %vm671_vm11, 1.0, %v1205_v4 }
 0x2fa   :  { %v693_v50 = vsub.f32 %v1098_v48, %v1102_v49  ;;  %v638_v52 = vadd.s32 %v637_v45, %v635_v47  ;;  %v583_v63 = vadd.s32 %v582_v54, %v580_v53 }
 0x2fb   :  { %v649_v55 = vpop.xlane.xlu1 %648 }
 0x2fc   :  { %vm682_vm10 = vcmp.eq.s32.totalorder %v1251_v41, %v638_v52  ;;  %v650_v58 = vcvt.f32.s32 %v649_v55  ;;  %1158 = vmatprep.subr.msk.mxu0 %vm503_vm4, %v693_v50  ;;  %vm672_vm13 = vcmp.eq.s32.totalorder %v1251_v41, %v583_v63  ;;  %v1071_v55 = vld [vmem:[#allocation2] sm:$0x1] }
 0x2fd   :  { %v1103_v60 = vsel %vm682_vm10, 1.0, %v1205_v4  ;;  %1159 = vmatpush3.xpose.msk.msra.mxu0 %vm503_vm4, %v693_v50  ;;  %v1101_v12 = vsel %vm672_vm13, 1.0, %v1205_v4 }
 0x2fe   :  { %v694_v62 = vsub.f32 %v1099_v59, %v1103_v60  ;;  %v653_v0 = vadd.s32 %v652_v56, %v650_v58 }
 0x2ff   :  { %v664_v2 = vpop.xlane.xlu1 %663 }
 0x300   :  { %vm683_vm12 = vcmp.eq.s32.totalorder %v1251_v41, %v653_v0  ;;  %v665_v5 = vcvt.f32.s32 %v664_v2  ;;  %1163 = vmatprep.subr.msk.mxu1 %vm503_vm4, %v694_v62  ;;  %1161 = vmatmul.mubr.msk.f32.vlgmr.msra.gmra.mxu0 %vm503_vm4, %v13_v61 }
 0x301   :  { %v1104_v7 = vsel %vm683_vm12, 1.0, %v1205_v4  ;;  %1164 = vmatpush3.xpose.msk.msra.mxu1 %vm503_vm4, %v694_v62  ;;  %1170 = vmatprep.mubr.msk.f32.mxu0 %vm503_vm4, %v16_v1 }
 0x302   :  { %v695_v9 = vsub.f32 %v1100_v6, %v1104_v7  ;;  %v668_v10 = vadd.s32 %v667_v3, %v665_v5 }
 0x304   :  { %vm684_vm14 = vcmp.eq.s32.totalorder %v1251_v41, %v668_v10  ;;  %1166 = vmatmul.mubr.msk.f32.vlgmr.msra.gmra.mxu1 %vm503_vm4, %v15_v8  ;;  %1168 = vmatprep.subr.msk.mxu0 %vm503_vm4, %v695_v9  ;;  %v19_v41 = vld [vmem:[%s1364_s0 + $0x38] sm:$0xff]  ;;  %s1207_s0 = smov [#allocation2]  }
 0x305   :  { %v1105_v13 = vsel %vm684_vm14, 1.0, %v1205_v4  ;;  %1169 = vmatpush3.xpose.msk.msra.mxu0 %vm503_vm4, %v695_v9  ;;  %1175 = vmatprep.mubr.msk.f32.mxu1 %vm503_vm4, %v18_v11  ;;  %s1082_s4 = sshll.u32 %s1207_s0, 4  ;;  %s1083_s4 = int_to_ptr.vmem [resolvable:$true] %s1082_s4 }
 0x306   :  { %v696_v15 = vsub.f32 %v1101_v12, %v1105_v13  ;;  %s1183_s6 = scalar_lea.vmem %s1083_s4, 16  ;;  %s1187_s7 = scalar_lea.vmem %s1083_s4, 32 }
 0x307   :  { %p1184_p0 = scmp.ne.s32.totalorder %s1083_s4, %s1183_s6  ;;  %p1188_p1 = scmp.lt.s32.totalorder %s1083_s4, %s1083_s4 }
 0x308   :  { %1171 = vmatmul.mubr.msk.f32.vlgmr.msra.gmra.mxu0 %vm503_vm4, %v17_v14  ;;  %1173 = vmatprep.subr.msk.mxu1 %vm503_vm4, %v696_v15  ;;  %p1189_p2 = scmp.lt.s32.totalorder %s1187_s7, %s1183_s6 }
 0x309   :  { %1174 = vmatpush3.xpose.msk.msra.mxu1 %vm503_vm4, %v696_v15 }
 0x30a   :  { %p1190_p3 = por %p1189_p2, %p1188_p1 }
 0x30c   :  { %1176 = vmatmul.mubr.msk.f32.vlgmr.msra.gmra.mxu1 %vm503_vm4, %v19_v41  ;;  %p1191_p4 = pnand %p1190_p3, %p1184_p0 }
 0x3c0   :  { %v1162_v16 = vpop.f32.mrf.mxu0 }
 0x3c1   :  { %v1034_v17 = vmul.f32 %v1162_v16, %v13_v61 }
 0x3c2   :  { %v772_v18 = vpop.f32.mrf.mxu0 }
 0x3c3   :  { %v1033_v21 = vmul.f32 %v772_v18, %v1289_v19  ;;  %v1042_v23 = vsel %vm503_vm4, %v1034_v17, 0.0 }
 0x3c4   :  { %v1167_v22 = vpop.f32.mrf.mxu1 }
 0x3c5   :  { %v1041_v24 = vsel %vm503_vm4, %v1033_v21, 0.0  ;;  %v1036_v26 = vmul.f32 %v1167_v22, %v15_v8 }
 0x3c6   :  { %v856_v25 = vpop.f32.mrf.mxu1  ;;  %v1043_v28 = vadd.f32 %v1042_v23, %v1041_v24 }
 0x3c7   :  { %v1035_v27 = vmul.f32 %v856_v25, %v1296_v20  ;;  %v1046_v33 = vsel %vm503_vm4, %v1036_v26, 0.0 }
 0x3c8   :  { %v1172_v29 = vpop.f32.mrf.mxu0 }
 0x3c9   :  { %v1044_v30 = vsel %vm503_vm4, %v1035_v27, 0.0  ;;  %v1038_v34 = vmul.f32 %v1172_v29, %v17_v14 }
 0x3ca   :  { %v1045_v31 = vadd.f32 %v1044_v30, %v1043_v28  ;;  %v940_v32 = vpop.f32.mrf.mxu0 }
 0x3cb   :  { %v1037_v35 = vmul.f32 %v940_v32, %v16_v1  ;;  %v1050_v40 = vsel %vm503_vm4, %v1038_v34, 0.0 }
 0x3cc   :  { %v1047_v19 = vadd.f32 %v1046_v33, %v1045_v31  ;;  %v1177_v36 = vpop.f32.mrf.mxu1 }
 0x3cd   :  { %v1048_v37 = vsel %vm503_vm4, %v1037_v35, 0.0  ;;  %v1040_v42 = vmul.f32 %v1177_v36, %v19_v41 }
 0x3ce   :  { %v1049_v38 = vadd.f32 %v1048_v37, %v1047_v19  ;;  %v1024_v39 = vpop.f32.mrf.mxu1 }
 0x3cf   :  { %v1039_v20 = vmul.f32 %v1024_v39, %v18_v11  ;;  %v1054_v46 = vsel %vm503_vm4, %v1040_v42, 0.0 }
 0x3d0   :  { %v1051_v43 = vadd.f32 %v1050_v40, %v1049_v38 }
 0x3d1   :  { %v1052_v44 = vsel %vm503_vm4, %v1039_v20, 0.0 }
 0x3d2   :  { %v1053_v45 = vadd.f32 %v1052_v44, %v1051_v43 }
 0x3d4   :  { %v1055_v47 = vadd.f32 %v1054_v46, %v1053_v45 }
 0x3d6   :  { %1056 = vadd.xlane.f32.xlu0 %v1055_v47 }
 0x45f   :  { %v1057_v48 = vpop.xlane.xlu0 %1056 }
 0x460   :  { %v1058_v49 = vrot.slane %v1057_v48, 4 }
 0x462   :  { %v1059_v50 = vadd.f32 %v1058_v49, %v1057_v48 }
 0x464   :  { %v1060_v51 = vrot.slane %v1059_v50, 2 }
 0x466   :  { %v1061_v52 = vadd.f32 %v1060_v51, %v1059_v50 }
 0x468   :  { %v1062_v53 = vrot.slane %v1061_v52, 1 }
 0x46a   :  { %v1063_v54 = vadd.f32 %v1062_v53, %v1061_v52 }
 0x46c   :  { %1178 = vpush %v1063_v54 }
 0x49d   :  { %s1179_s5 = spop %1178 }
 0x49e   :  { %v1072_v56 = vstv %s1179_s5 }
 0x49f   :  { %v1073_v57 = vadd.f32 %v1072_v56, %v1071_v55 }
 0x4a1   :  { %1075 = vst.msk [vmem:[#allocation2] sm:$0x1] %vm1069_vm15, %v1073_v57 }
 0x4a2   :  { %1194 = shalt.err (!%p1191_p4)
}
 0x4a3   :  { %1085 = dma.vmem_to_hbm [thread:$0]  %s1083_s4, 16, %s1366_s2, [#allocation3]  }
 0x4a4   :  { %1203 = dma.done.wait [#allocation3], 16  }
 0x4a5   :  { %1204 = vsyncadd [#allocation3], 4294967280 }
 0x4a6   :  { %1089 = vsyncpa [#allocation3], 1 }

</bundles_post_ra>
